<compile_context>
chip_gen: v7x
topology: tpu7x:2x2x1
jax: 0.10.0
libtpu: 0.0.40
codegen_flags: <defaults>
</compile_context>

<pallas_src>
import functools

import jax
import jax.numpy as jnp
from jax.experimental import pallas as pl
from jax.experimental.pallas import tpu as pltpu


def attention_kernel(x_ref, wqkv_t_ref, bqkv_ref, wo_t_ref, bo_ref, out_ref,
                     *, num_heads, head_dim, hidden):
    Bt, S, D2 = x_ref.shape
    H = hidden

    # ---- Fused QKV projection: bf16 operands on the MXU, f32 accumulation ----
    # (1/sqrt(head_dim) already folded into the Wq/bq slices by the wrapper.)
    # NOTE: merging (Bt, S) onto the sublane axis is a free view only when S is
    # a multiple of 8; pad S on the host for odd sequence lengths.
    x2d = x_ref[...].astype(jnp.bfloat16).reshape(Bt * S, D2)
    qkv = jnp.dot(x2d, wqkv_t_ref[...], preferred_element_type=jnp.float32)
    qkv = (qkv + bqkv_ref[...]).reshape(Bt, S, 3 * H)

    q = qkv[:, :, 0 * H:1 * H]        # (Bt, S, H), query slice is pre-scaled
    k = qkv[:, :, 1 * H:2 * H]
    v = qkv[:, :, 2 * H:3 * H]

    # ---- Per-head attention with the mean over queries folded in early ----
    #   mean_q( softmax(QK^T) V ) == ( mean_q softmax(QK^T) ) V
    ctx_heads = []
    for h in range(num_heads):        # small static unroll (see header note)
        sl = slice(h * head_dim, (h + 1) * head_dim)
        qh = q[:, :, sl].astype(jnp.bfloat16)             # (Bt, S, hd)
        kh = k[:, :, sl].astype(jnp.bfloat16)
        vh = v[:, :, sl].astype(jnp.bfloat16)

        scores = jnp.einsum('bqd,bkd->bqk', qh, kh,
                            preferred_element_type=jnp.float32)   # (Bt, S, S)
        m = jnp.max(scores, axis=-1, keepdims=True)               # f32 softmax
        e = jnp.exp(scores - m)
        inv = pl.reciprocal(jnp.sum(e, axis=-1, keepdims=True), approx=True)
        attn = e * inv
        # TODO(synk): nn.Dropout on attention weights omitted (inference semantics).

        # Mean over queries first (linear), then one tiny (Bt,1,S)x(Bt,S,hd) matmul.
        attn_mean = jnp.mean(attn, axis=1, keepdims=True).astype(jnp.bfloat16)
        ctx_heads.append(jnp.einsum('bqk,bkd->bqd', attn_mean, vh,
                                    preferred_element_type=jnp.float32))  # (Bt,1,hd)

    # Heads contiguous on the lane axis -> single output projection matmul.
    ctx = jnp.concatenate(ctx_heads, axis=-1).reshape(Bt, H)       # (Bt, H)
    out = jnp.dot(ctx.astype(jnp.bfloat16), wo_t_ref[...],
                  preferred_element_type=jnp.float32) + bo_ref[...]
    out_ref[0] = out                                               # (Bt, 2H) slab


def _pick_bt(B, S, num_heads):
    """Batch rows per grid step."""
    # Bound the f32 (bt, S, S) softmax intermediates (conservatively counting
    # scores/e/attn for every head) to a few MiB so a block fits v7x's 32 MiB
    # scoped VMEM default alongside the double-buffered input block.
    per_row_bytes = max(1, 3 * num_heads * S * S * 4)
    bt = max(1, min(B, (4 * 1024 * 1024) // per_row_bytes))
    # Give the v7x megacore at least 2 grid steps to shard across TensorCores.
    if B >= 2:
        bt = min(bt, max(1, B // 2))
    # Sublane-align the (bt, 2H) output slab when possible.
    if bt >= 8:
        bt = (bt // 8) * 8
    # Must divide B so the (B//bt, bt, ...) reshape of the output is exact.
    while B % bt != 0:
        bt -= 1
    return max(bt, 1)


def improved_attention_layer(x, params, num_heads):
    """x: (B, S, 2H) float32.  params: (Wq, bq, Wk, bk, Wv, bv, Wo, bo) in torch
    nn.Linear convention (out_features, in_features)."""
    B, S, D2 = x.shape
    H = D2 // 2
    head_dim = H // num_heads
    wq, bq, wk, bk, wv, bv, wo, bo = params

    # One-time packing: fold 1/sqrt(head_dim) into the query slice, pre-transpose,
    # and cast matmul weights to bf16 (MXU-native on v5e/v6e/v7x, halves weight
    # DMA/VMEM).  Biases stay f32 (added to f32 accumulators).
    scale = float(head_dim) ** -0.5
    wqkv_t = jnp.concatenate([wq * scale, wk, wv], axis=0).T.astype(jnp.bfloat16)  # (2H, 3H)
    bqkv = jnp.concatenate([bq * scale, bk, bv], axis=-1).astype(jnp.float32)      # (1, 3H)
    wo_t = wo.T.astype(jnp.bfloat16)                                               # (H, 2H)
    bo = bo.astype(jnp.float32)                                                    # (1, 2H)

    bt = _pick_bt(B, S, num_heads)
    g = B // bt

    kernel = functools.partial(attention_kernel, num_heads=num_heads,
                               head_dim=head_dim, hidden=H)

    out = pl.pallas_call(
        kernel,
        out_shape=jax.ShapeDtypeStruct((g, bt, D2), jnp.float32),
        grid_spec=pltpu.PrefetchScalarGridSpec(
            num_scalar_prefetch=0,
            grid=(g,),
            in_specs=[
                pl.BlockSpec((bt, S, D2), lambda b: (b, 0, 0)),     # lstm_output tile
                # Constant-index weight blocks (for large H: single-buffer these
                # with pipeline_mode=pl.Buffered(1) to stay inside v7x VMEM).
                pl.BlockSpec((D2, 3 * H), lambda b: (0, 0)),        # packed Wqkv^T (bf16)
                pl.BlockSpec((1, 3 * H), lambda b: (0, 0)),         # packed bias (f32)
                pl.BlockSpec((H, D2), lambda b: (0, 0)),            # Wo^T (bf16)
                pl.BlockSpec((1, D2), lambda b: (0, 0)),            # bo (f32)
            ],
            # Leading grid dim on the output => last two block dims are always
            # full-extent (valid for any bt), while the stored slab stays a
            # lane-dense (bt, 2H) block.
            out_specs=pl.BlockSpec((1, bt, D2), lambda b: (b, 0, 0)),
        ),
        compiler_params=pltpu.CompilerParams(dimension_semantics=("parallel",)),
    )(x, wqkv_t, bqkv, wo_t, bo)
    return out.reshape(B, D2)  # free: merge leading dims


def reference_forward(x, params, num_heads):
    """Pure-JAX reference mirroring the PyTorch forward (dropout in eval mode)."""
    B, S, D2 = x.shape
    H = D2 // 2
    hd = H // num_heads
    wq, bq, wk, bk, wv, bv, wo, bo = params
    q = x @ wq.T + bq
    k = x @ wk.T + bk
    v = x @ wv.T + bv
    q = q.reshape(B, S, num_heads, hd).transpose(0, 2, 1, 3)
    k = k.reshape(B, S, num_heads, hd).transpose(0, 2, 1, 3)
    v = v.reshape(B, S, num_heads, hd).transpose(0, 2, 1, 3)
    scores = jnp.einsum("bhqd,bhkd->bhqk", q, k) / jnp.sqrt(jnp.float32(hd))
    attn = jax.nn.softmax(scores, axis=-1)
    ctx = jnp.einsum("bhqk,bhkd->bhqd", attn, v)
    ctx = ctx.transpose(0, 2, 1, 3).reshape(B, S, H)
    out = ctx @ wo.T + bo
    return out.mean(axis=1)


def init_params(key, hidden_size):
    """Deterministic synthetic init with PyTorch Linear shapes."""
    H = hidden_size
    D2 = 2 * H
    ks = jax.random.split(key, 8)
    wq = jax.random.normal(ks[0], (H, D2), jnp.float32) * 0.05
    bq = jax.random.normal(ks[1], (1, H), jnp.float32) * 0.05
    wk = jax.random.normal(ks[2], (H, D2), jnp.float32) * 0.05
    bk = jax.random.normal(ks[3], (1, H), jnp.float32) * 0.05
    wv = jax.random.normal(ks[4], (H, D2), jnp.float32) * 0.05
    bv = jax.random.normal(ks[5], (1, H), jnp.float32) * 0.05
    wo = jax.random.normal(ks[6], (D2, H), jnp.float32) * 0.05
    bo = jax.random.normal(ks[7], (1, D2), jnp.float32) * 0.05
    return (wq, bq, wk, bk, wv, bv, wo, bo)


if __name__ == "__main__":
    B, S, H = 2, 8, 32
    num_heads = 4
    D2 = 2 * H

    key = jax.random.PRNGKey(0)
    x_key, p_key = jax.random.split(key)
    x = jax.random.normal(x_key, (B, S, D2), jnp.float32)
    params = init_params(p_key, H)

    out = improved_attention_layer(x, params, num_heads)
    out = jax.block_until_ready(out)

    ref = reference_forward(x, params, num_heads)
    assert out.shape == (B, D2)
    # Tolerance accounts for bf16 MXU operands and the approx (EUP) reciprocal.
    assert jnp.allclose(out, ref, atol=2e-2, rtol=2e-2), "mismatch vs reference"

    print("KERNEL_OK")
</pallas_src>

<mosaic_0001>
module attributes {stable_mosaic.version = 11 : i64} {
  func.func @attention_kernel(%arg0: i32, %arg1: memref<1x8x64xf32, #tpu.memory_space<vmem>>, %arg2: memref<64x96xbf16, #tpu.memory_space<vmem>>, %arg3: memref<1x96xf32, #tpu.memory_space<vmem>>, %arg4: memref<32x64xbf16, #tpu.memory_space<vmem>>, %arg5: memref<1x64xf32, #tpu.memory_space<vmem>>, %arg6: memref<1x1x64xf32, #tpu.memory_space<vmem>>) attributes {dimension_semantics = [#tpu.dimension_semantics<parallel>], iteration_bounds = array<i64: 2>, scalar_prefetch = 0 : i64, scratch_operands = 0 : i64, tpu.core_type = #tpu.core_type<tc>, window_params = [{transform_indices = @transform_0, window_bounds = array<i64: 1, 8, 64>}, {pipeline_mode = #tpu.pipeline_mode<synchronous>, transform_indices = @transform_1, window_bounds = array<i64: 64, 96>}, {pipeline_mode = #tpu.pipeline_mode<synchronous>, transform_indices = @transform_2, window_bounds = array<i64: 1, 96>}, {pipeline_mode = #tpu.pipeline_mode<synchronous>, transform_indices = @transform_3, window_bounds = array<i64: 32, 64>}, {pipeline_mode = #tpu.pipeline_mode<synchronous>, transform_indices = @transform_4, window_bounds = array<i64: 1, 64>}, {transform_indices = @transform_5, window_bounds = array<i64: 1, 1, 64>}]} {
    %c0 = arith.constant 0 : index
    %c0_0 = arith.constant 0 : index
    %c0_1 = arith.constant 0 : index
    %0 = vector.load %arg1[%c0, %c0_0, %c0_1] : memref<1x8x64xf32, #tpu.memory_space<vmem>>, vector<1x8x64xf32>
    %1 = arith.truncf %0 : vector<1x8x64xf32> to vector<1x8x64xbf16>
    %2 = vector.shape_cast %1 : vector<1x8x64xbf16> to vector<8x64xbf16>
    %c0_2 = arith.constant 0 : index
    %c0_3 = arith.constant 0 : index
    %3 = vector.load %arg2[%c0_2, %c0_3] : memref<64x96xbf16, #tpu.memory_space<vmem>>, vector<64x96xbf16>
    %cst = arith.constant dense<0.000000e+00> : vector<8x96xf32>
    %4 = tpu.matmul %2, %3, %cst {dimension_numbers = #tpu.dot_dimension_numbers<[1], [0], [0], [1], [0, 0, 1, 1], [], []>} : vector<8x64xbf16>, vector<64x96xbf16>, vector<8x96xf32> -> vector<8x96xf32>
    %c0_4 = arith.constant 0 : index
    %c0_5 = arith.constant 0 : index
    %5 = vector.load %arg3[%c0_4, %c0_5] : memref<1x96xf32, #tpu.memory_space<vmem>>, vector<1x96xf32>
    %6 = vector.broadcast %5 : vector<1x96xf32> to vector<8x96xf32>
    %7 = arith.addf %4, %6 : vector<8x96xf32>
    %8 = vector.shape_cast %7 : vector<8x96xf32> to vector<1x8x96xf32>
    %9 = vector.extract_strided_slice %8 {offsets = [0, 0, 0], sizes = [1, 8, 32], strides = [1, 1, 1]} : vector<1x8x96xf32> to vector<1x8x32xf32>
    %10 = vector.extract_strided_slice %8 {offsets = [0, 0, 32], sizes = [1, 8, 32], strides = [1, 1, 1]} : vector<1x8x96xf32> to vector<1x8x32xf32>
    %11 = vector.extract_strided_slice %8 {offsets = [0, 0, 64], sizes = [1, 8, 32], strides = [1, 1, 1]} : vector<1x8x96xf32> to vector<1x8x32xf32>
    %12 = vector.extract_strided_slice %9 {offsets = [0, 0, 0], sizes = [1, 8, 8], strides = [1, 1, 1]} : vector<1x8x32xf32> to vector<1x8x8xf32>
    %13 = arith.truncf %12 : vector<1x8x8xf32> to vector<1x8x8xbf16>
    %14 = vector.extract_strided_slice %10 {offsets = [0, 0, 0], sizes = [1, 8, 8], strides = [1, 1, 1]} : vector<1x8x32xf32> to vector<1x8x8xf32>
    %15 = arith.truncf %14 : vector<1x8x8xf32> to vector<1x8x8xbf16>
    %16 = vector.extract_strided_slice %11 {offsets = [0, 0, 0], sizes = [1, 8, 8], strides = [1, 1, 1]} : vector<1x8x32xf32> to vector<1x8x8xf32>
    %17 = arith.truncf %16 : vector<1x8x8xf32> to vector<1x8x8xbf16>
    "tpu.trace_start"() <{level = 10 : i32, message = "bqd,bkd->bqk"}> : () -> ()
    %cst_6 = arith.constant dense<0.000000e+00> : vector<1x8x8xf32>
    %18 = tpu.matmul %13, %15, %cst_6 {dimension_numbers = #tpu.dot_dimension_numbers<[2], [2], [1], [1], [0, 0, 0, 1, 1, 1], [0], [0]>} : vector<1x8x8xbf16>, vector<1x8x8xbf16>, vector<1x8x8xf32> -> vector<1x8x8xf32>
    "tpu.trace_stop"() : () -> ()
    %cst_7 = arith.constant dense<0xFF800000> : vector<1x8xf32>
    %19 = vector.multi_reduction <maximumf>, %18, %cst_7 [2] : vector<1x8x8xf32> to vector<1x8xf32>
    %20 = vector.shape_cast %19 : vector<1x8xf32> to vector<1x8x1xf32>
    %21 = vector.broadcast %20 : vector<1x8x1xf32> to vector<1x8x8xf32>
    %22 = arith.subf %18, %21 : vector<1x8x8xf32>
    %23 = math.exp %22 : vector<1x8x8xf32>
    %cst_8 = arith.constant dense<0.000000e+00> : vector<1x8xf32>
    %24 = vector.multi_reduction <add>, %23, %cst_8 [2] : vector<1x8x8xf32> to vector<1x8xf32>
    %25 = vector.shape_cast %24 : vector<1x8xf32> to vector<1x8x1xf32>
    %26 = tpu.reciprocal %25 {approx = true} : vector<1x8x1xf32> -> vector<1x8x1xf32>
    %27 = vector.broadcast %26 : vector<1x8x1xf32> to vector<1x8x8xf32>
    %28 = arith.mulf %23, %27 : vector<1x8x8xf32>
    %cst_9 = arith.constant dense<0.000000e+00> : vector<1x8xf32>
    %29 = vector.multi_reduction <add>, %28, %cst_9 [1] : vector<1x8x8xf32> to vector<1x8xf32>
    %30 = vector.shape_cast %29 : vector<1x8xf32> to vector<1x1x8xf32>
    %cst_10 = arith.constant 8.000000e+00 : f32
    %31 = vector.broadcast %cst_10 : f32 to vector<1x1x8xf32>
    %32 = arith.divf %30, %31 : vector<1x1x8xf32>
    %33 = arith.truncf %32 : vector<1x1x8xf32> to vector<1x1x8xbf16>
    "tpu.trace_start"() <{level = 10 : i32, message = "bqk,bkd->bqd"}> : () -> ()
    %cst_11 = arith.constant dense<0.000000e+00> : vector<1x1x8xf32>
    %34 = tpu.matmul %33, %17, %cst_11 {dimension_numbers = #tpu.dot_dimension_numbers<[2], [1], [1], [2], [0, 0, 0, 1, 1, 2], [0], [0]>} : vector<1x1x8xbf16>, vector<1x8x8xbf16>, vector<1x1x8xf32> -> vector<1x1x8xf32>
    "tpu.trace_stop"() : () -> ()
    %35 = vector.extract_strided_slice %9 {offsets = [0, 0, 8], sizes = [1, 8, 8], strides = [1, 1, 1]} : vector<1x8x32xf32> to vector<1x8x8xf32>
    %36 = arith.truncf %35 : vector<1x8x8xf32> to vector<1x8x8xbf16>
    %37 = vector.extract_strided_slice %10 {offsets = [0, 0, 8], sizes = [1, 8, 8], strides = [1, 1, 1]} : vector<1x8x32xf32> to vector<1x8x8xf32>
    %38 = arith.truncf %37 : vector<1x8x8xf32> to vector<1x8x8xbf16>
    %39 = vector.extract_strided_slice %11 {offsets = [0, 0, 8], sizes = [1, 8, 8], strides = [1, 1, 1]} : vector<1x8x32xf32> to vector<1x8x8xf32>
    %40 = arith.truncf %39 : vector<1x8x8xf32> to vector<1x8x8xbf16>
    "tpu.trace_start"() <{level = 10 : i32, message = "bqd,bkd->bqk"}> : () -> ()
    %cst_12 = arith.constant dense<0.000000e+00> : vector<1x8x8xf32>
    %41 = tpu.matmul %36, %38, %cst_12 {dimension_numbers = #tpu.dot_dimension_numbers<[2], [2], [1], [1], [0, 0, 0, 1, 1, 1], [0], [0]>} : vector<1x8x8xbf16>, vector<1x8x8xbf16>, vector<1x8x8xf32> -> vector<1x8x8xf32>
    "tpu.trace_stop"() : () -> ()
    %cst_13 = arith.constant dense<0xFF800000> : vector<1x8xf32>
    %42 = vector.multi_reduction <maximumf>, %41, %cst_13 [2] : vector<1x8x8xf32> to vector<1x8xf32>
    %43 = vector.shape_cast %42 : vector<1x8xf32> to vector<1x8x1xf32>
    %44 = vector.broadcast %43 : vector<1x8x1xf32> to vector<1x8x8xf32>
    %45 = arith.subf %41, %44 : vector<1x8x8xf32>
    %46 = math.exp %45 : vector<1x8x8xf32>
    %cst_14 = arith.constant dense<0.000000e+00> : vector<1x8xf32>
    %47 = vector.multi_reduction <add>, %46, %cst_14 [2] : vector<1x8x8xf32> to vector<1x8xf32>
    %48 = vector.shape_cast %47 : vector<1x8xf32> to vector<1x8x1xf32>
    %49 = tpu.reciprocal %48 {approx = true} : vector<1x8x1xf32> -> vector<1x8x1xf32>
    %50 = vector.broadcast %49 : vector<1x8x1xf32> to vector<1x8x8xf32>
    %51 = arith.mulf %46, %50 : vector<1x8x8xf32>
    %cst_15 = arith.constant dense<0.000000e+00> : vector<1x8xf32>
    %52 = vector.multi_reduction <add>, %51, %cst_15 [1] : vector<1x8x8xf32> to vector<1x8xf32>
    %53 = vector.shape_cast %52 : vector<1x8xf32> to vector<1x1x8xf32>
    %cst_16 = arith.constant 8.000000e+00 : f32
    %54 = vector.broadcast %cst_16 : f32 to vector<1x1x8xf32>
    %55 = arith.divf %53, %54 : vector<1x1x8xf32>
    %56 = arith.truncf %55 : vector<1x1x8xf32> to vector<1x1x8xbf16>
    "tpu.trace_start"() <{level = 10 : i32, message = "bqk,bkd->bqd"}> : () -> ()
    %cst_17 = arith.constant dense<0.000000e+00> : vector<1x1x8xf32>
    %57 = tpu.matmul %56, %40, %cst_17 {dimension_numbers = #tpu.dot_dimension_numbers<[2], [1], [1], [2], [0, 0, 0, 1, 1, 2], [0], [0]>} : vector<1x1x8xbf16>, vector<1x8x8xbf16>, vector<1x1x8xf32> -> vector<1x1x8xf32>
    "tpu.trace_stop"() : () -> ()
    %58 = vector.extract_strided_slice %9 {offsets = [0, 0, 16], sizes = [1, 8, 8], strides = [1, 1, 1]} : vector<1x8x32xf32> to vector<1x8x8xf32>
    %59 = arith.truncf %58 : vector<1x8x8xf32> to vector<1x8x8xbf16>
    %60 = vector.extract_strided_slice %10 {offsets = [0, 0, 16], sizes = [1, 8, 8], strides = [1, 1, 1]} : vector<1x8x32xf32> to vector<1x8x8xf32>
    %61 = arith.truncf %60 : vector<1x8x8xf32> to vector<1x8x8xbf16>
    %62 = vector.extract_strided_slice %11 {offsets = [0, 0, 16], sizes = [1, 8, 8], strides = [1, 1, 1]} : vector<1x8x32xf32> to vector<1x8x8xf32>
    %63 = arith.truncf %62 : vector<1x8x8xf32> to vector<1x8x8xbf16>
    "tpu.trace_start"() <{level = 10 : i32, message = "bqd,bkd->bqk"}> : () -> ()
    %cst_18 = arith.constant dense<0.000000e+00> : vector<1x8x8xf32>
    %64 = tpu.matmul %59, %61, %cst_18 {dimension_numbers = #tpu.dot_dimension_numbers<[2], [2], [1], [1], [0, 0, 0, 1, 1, 1], [0], [0]>} : vector<1x8x8xbf16>, vector<1x8x8xbf16>, vector<1x8x8xf32> -> vector<1x8x8xf32>
    "tpu.trace_stop"() : () -> ()
    %cst_19 = arith.constant dense<0xFF800000> : vector<1x8xf32>
    %65 = vector.multi_reduction <maximumf>, %64, %cst_19 [2] : vector<1x8x8xf32> to vector<1x8xf32>
    %66 = vector.shape_cast %65 : vector<1x8xf32> to vector<1x8x1xf32>
    %67 = vector.broadcast %66 : vector<1x8x1xf32> to vector<1x8x8xf32>
    %68 = arith.subf %64, %67 : vector<1x8x8xf32>
    %69 = math.exp %68 : vector<1x8x8xf32>
    %cst_20 = arith.constant dense<0.000000e+00> : vector<1x8xf32>
    %70 = vector.multi_reduction <add>, %69, %cst_20 [2] : vector<1x8x8xf32> to vector<1x8xf32>
    %71 = vector.shape_cast %70 : vector<1x8xf32> to vector<1x8x1xf32>
    %72 = tpu.reciprocal %71 {approx = true} : vector<1x8x1xf32> -> vector<1x8x1xf32>
    %73 = vector.broadcast %72 : vector<1x8x1xf32> to vector<1x8x8xf32>
    %74 = arith.mulf %69, %73 : vector<1x8x8xf32>
    %cst_21 = arith.constant dense<0.000000e+00> : vector<1x8xf32>
    %75 = vector.multi_reduction <add>, %74, %cst_21 [1] : vector<1x8x8xf32> to vector<1x8xf32>
    %76 = vector.shape_cast %75 : vector<1x8xf32> to vector<1x1x8xf32>
    %cst_22 = arith.constant 8.000000e+00 : f32
    %77 = vector.broadcast %cst_22 : f32 to vector<1x1x8xf32>
    %78 = arith.divf %76, %77 : vector<1x1x8xf32>
    %79 = arith.truncf %78 : vector<1x1x8xf32> to vector<1x1x8xbf16>
    "tpu.trace_start"() <{level = 10 : i32, message = "bqk,bkd->bqd"}> : () -> ()
    %cst_23 = arith.constant dense<0.000000e+00> : vector<1x1x8xf32>
    %80 = tpu.matmul %79, %63, %cst_23 {dimension_numbers = #tpu.dot_dimension_numbers<[2], [1], [1], [2], [0, 0, 0, 1, 1, 2], [0], [0]>} : vector<1x1x8xbf16>, vector<1x8x8xbf16>, vector<1x1x8xf32> -> vector<1x1x8xf32>
    "tpu.trace_stop"() : () -> ()
    %81 = vector.extract_strided_slice %9 {offsets = [0, 0, 24], sizes = [1, 8, 8], strides = [1, 1, 1]} : vector<1x8x32xf32> to vector<1x8x8xf32>
    %82 = arith.truncf %81 : vector<1x8x8xf32> to vector<1x8x8xbf16>
    %83 = vector.extract_strided_slice %10 {offsets = [0, 0, 24], sizes = [1, 8, 8], strides = [1, 1, 1]} : vector<1x8x32xf32> to vector<1x8x8xf32>
    %84 = arith.truncf %83 : vector<1x8x8xf32> to vector<1x8x8xbf16>
    %85 = vector.extract_strided_slice %11 {offsets = [0, 0, 24], sizes = [1, 8, 8], strides = [1, 1, 1]} : vector<1x8x32xf32> to vector<1x8x8xf32>
    %86 = arith.truncf %85 : vector<1x8x8xf32> to vector<1x8x8xbf16>
    "tpu.trace_start"() <{level = 10 : i32, message = "bqd,bkd->bqk"}> : () -> ()
    %cst_24 = arith.constant dense<0.000000e+00> : vector<1x8x8xf32>
    %87 = tpu.matmul %82, %84, %cst_24 {dimension_numbers = #tpu.dot_dimension_numbers<[2], [2], [1], [1], [0, 0, 0, 1, 1, 1], [0], [0]>} : vector<1x8x8xbf16>, vector<1x8x8xbf16>, vector<1x8x8xf32> -> vector<1x8x8xf32>
    "tpu.trace_stop"() : () -> ()
    %cst_25 = arith.constant dense<0xFF800000> : vector<1x8xf32>
    %88 = vector.multi_reduction <maximumf>, %87, %cst_25 [2] : vector<1x8x8xf32> to vector<1x8xf32>
    %89 = vector.shape_cast %88 : vector<1x8xf32> to vector<1x8x1xf32>
    %90 = vector.broadcast %89 : vector<1x8x1xf32> to vector<1x8x8xf32>
    %91 = arith.subf %87, %90 : vector<1x8x8xf32>
    %92 = math.exp %91 : vector<1x8x8xf32>
    %cst_26 = arith.constant dense<0.000000e+00> : vector<1x8xf32>
    %93 = vector.multi_reduction <add>, %92, %cst_26 [2] : vector<1x8x8xf32> to vector<1x8xf32>
    %94 = vector.shape_cast %93 : vector<1x8xf32> to vector<1x8x1xf32>
    %95 = tpu.reciprocal %94 {approx = true} : vector<1x8x1xf32> -> vector<1x8x1xf32>
    %96 = vector.broadcast %95 : vector<1x8x1xf32> to vector<1x8x8xf32>
    %97 = arith.mulf %92, %96 : vector<1x8x8xf32>
    %cst_27 = arith.constant dense<0.000000e+00> : vector<1x8xf32>
    %98 = vector.multi_reduction <add>, %97, %cst_27 [1] : vector<1x8x8xf32> to vector<1x8xf32>
    %99 = vector.shape_cast %98 : vector<1x8xf32> to vector<1x1x8xf32>
    %cst_28 = arith.constant 8.000000e+00 : f32
    %100 = vector.broadcast %cst_28 : f32 to vector<1x1x8xf32>
    %101 = arith.divf %99, %100 : vector<1x1x8xf32>
    %102 = arith.truncf %101 : vector<1x1x8xf32> to vector<1x1x8xbf16>
    "tpu.trace_start"() <{level = 10 : i32, message = "bqk,bkd->bqd"}> : () -> ()
    %cst_29 = arith.constant dense<0.000000e+00> : vector<1x1x8xf32>
    %103 = tpu.matmul %102, %86, %cst_29 {dimension_numbers = #tpu.dot_dimension_numbers<[2], [1], [1], [2], [0, 0, 0, 1, 1, 2], [0], [0]>} : vector<1x1x8xbf16>, vector<1x8x8xbf16>, vector<1x1x8xf32> -> vector<1x1x8xf32>
    "tpu.trace_stop"() : () -> ()
    %104 = tpu.concatenate %34, %57, %80, %103 in 2 : vector<1x1x8xf32>, vector<1x1x8xf32>, vector<1x1x8xf32>, vector<1x1x8xf32> -> vector<1x1x32xf32>
    %105 = vector.shape_cast %104 : vector<1x1x32xf32> to vector<1x32xf32>
    %106 = arith.truncf %105 : vector<1x32xf32> to vector<1x32xbf16>
    %c0_30 = arith.constant 0 : index
    %c0_31 = arith.constant 0 : index
    %107 = vector.load %arg4[%c0_30, %c0_31] : memref<32x64xbf16, #tpu.memory_space<vmem>>, vector<32x64xbf16>
    %cst_32 = arith.constant dense<0.000000e+00> : vector<1x64xf32>
    %108 = tpu.matmul %106, %107, %cst_32 {dimension_numbers = #tpu.dot_dimension_numbers<[1], [0], [0], [1], [0, 0, 1, 1], [], []>} : vector<1x32xbf16>, vector<32x64xbf16>, vector<1x64xf32> -> vector<1x64xf32>
    %c0_33 = arith.constant 0 : index
    %c0_34 = arith.constant 0 : index
    %109 = vector.load %arg5[%c0_33, %c0_34] : memref<1x64xf32, #tpu.memory_space<vmem>>, vector<1x64xf32>
    %110 = arith.addf %108, %109 : vector<1x64xf32>
    %c0_35 = arith.constant 0 : index
    %c0_36 = arith.constant 0 : index
    %c0_37 = arith.constant 0 : index
    %111 = vector.load %arg6[%c0_35, %c0_36, %c0_37] : memref<1x1x64xf32, #tpu.memory_space<vmem>>, vector<1x1x64xf32>
    %112 = vector.shape_cast %111 : vector<1x1x64xf32> to vector<1x64xf32>
    %113 = vector.shape_cast %110 : vector<1x64xf32> to vector<1x1x64xf32>
    tpu.vector_store %arg6[%c0_35, %c0_36, %c0_37], %113 {strides = array<i32>} : memref<1x1x64xf32, #tpu.memory_space<vmem>>, vector<1x1x64xf32>,
    return
  }
  func.func @transform_0(%arg0: i32) -> (i32, i32, i32) {
    %c0_i32 = arith.constant 0 : i32
    %c0_i32_0 = arith.constant 0 : i32
    %c0_i32_1 = arith.constant 0 : i32
    return %arg0, %c0_i32, %c0_i32_0 : i32, i32, i32
  }
  func.func @transform_1(%arg0: i32) -> (i32, i32) {
    %c0_i32 = arith.constant 0 : i32
    %c0_i32_0 = arith.constant 0 : i32
    %c0_i32_1 = arith.constant 0 : i32
    return %c0_i32, %c0_i32_0 : i32, i32
  }
  func.func @transform_2(%arg0: i32) -> (i32, i32) {
    %c0_i32 = arith.constant 0 : i32
    %c0_i32_0 = arith.constant 0 : i32
    %c0_i32_1 = arith.constant 0 : i32
    return %c0_i32, %c0_i32_0 : i32, i32
  }
  func.func @transform_3(%arg0: i32) -> (i32, i32) {
    %c0_i32 = arith.constant 0 : i32
    %c0_i32_0 = arith.constant 0 : i32
    %c0_i32_1 = arith.constant 0 : i32
    return %c0_i32, %c0_i32_0 : i32, i32
  }
  func.func @transform_4(%arg0: i32) -> (i32, i32) {
    %c0_i32 = arith.constant 0 : i32
    %c0_i32_0 = arith.constant 0 : i32
    %c0_i32_1 = arith.constant 0 : i32
    return %c0_i32, %c0_i32_0 : i32, i32
  }
  func.func @transform_5(%arg0: i32) -> (i32, i32, i32) {
    %c0_i32 = arith.constant 0 : i32
    %c0_i32_0 = arith.constant 0 : i32
    %c0_i32_1 = arith.constant 0 : i32
    return %arg0, %c0_i32, %c0_i32_0 : i32, i32, i32
  }
}

</mosaic_0001>

<bundles_post_ra>
// kernel: tpu_custom_call.1
= control target key start
LH: loop header
LB: loop body
LE: loop exit
PB: predicated region body
PF: predicated region fallthrough
CT: control target
= control target key end

     0   :  { %10 = vsyncpa [#allocation3], 0  ;;  %s1765_s0 = inlined_call_operand.hbm [shape: f32[2,8,64], index: 0, kind: input, shape index: {}]   ;;  %s1766_s1 = inlined_call_operand.hbm [shape: bf16[64,96], index: 1, kind: input, shape index: {}]   ;;  %s1767_s2 = inlined_call_operand.vmem [shape: f32[1,96], index: 2, kind: input, shape index: {}]   ;;  %s1768_s3 = inlined_call_operand.hbm [shape: bf16[32,64], index: 3, kind: input, shape index: {}]   ;;  %s1769_s4 = inlined_call_operand.vmem [shape: f32[1,64], index: 4, kind: input, shape index: {}]   ;;  %s1770_s5 = inlined_call_operand.hbm [shape: f32[2,1,64], index: 5, kind: output, shape index: {}]  }
   0x1   :  { %12 = vsyncpa [#allocation3 + $0x1], 0 }
   0x2   :  { %13 = vsyncpa [#allocation6], 0 }
   0x3   :  { %14 = vsyncpa [#allocation4], 0 }
   0x4   :  { %16 = vsyncpa [#allocation4 + $0x1], 0  ;;  %s1448_s18 = smov 0   ;;  %s1450_s19 = smov 0  }
   0x5   :  { %s1452_s20 = smov 0   ;;  %s1454_s21 = smov 0  }
   0x6 LB: > { %s1469_s22 = sadd.s32 4294967295, %s1394_s21   ;;  %s1008_s23 = sadd.s32 4294967294, %s1394_s21   ;;  %s1394_s21 = sphi %s1454_s21, %s1790_s21   ;;  %s1390_s20 = sphi %s1452_s20, %s1789_s20   ;;  %s1386_s19 = sphi %s1450_s19, %s1788_s19   ;;  %s1382_s18 = sphi %s1448_s18, %s1787_s18  }
   0x7   : > { %p42_p0 = scmp.ne.s32.totalorder %s1386_s19, %s1382_s18  ;;  %p1771_p1 = scmp.eq.s32.totalorder %s1469_s22, 0 }
   0x8   : > { %p156_p3 = scmp.eq.s32.totalorder %s1008_s23, 1  ;;  %p1009_p5 = scmp.ge.s32.totalorder %s1394_s21, 1 }
   0x9   : > { %p1478_p4 = por %p1771_p1, %p42_p0  ;;  %p163_p7 = scmp.lt.s32.totalorder %s1394_s21, 3 }
   0xa   : > { %p1483_p6 = por %p156_p3, %p42_p0  ;;  %s1396_s27 = smov [#allocation5]  }
   0xb   : > { %s1774_s24 = scalar_select %p1478_p4, 1, 0 }
   0xc   : > { %s1775_s25 = scalar_select %p1483_p6, 1, 0 }
   0xd   : > { %p1488_p8 = pnand %p1009_p5, %p163_p7  ;;  %s175_s28 = sshll.u32 %s1396_s27, 4  ;;  %s1492_s28 = int_to_ptr.vmem [resolvable:$true] %s175_s28 }
   0xe   : > { %s1397_s30 = smov [#allocation7]   ;;  %s1238_s9 = scalar_lea.hbm %s1766_s1, 512 }
   0xf   : > { %p1143_p9 = pneg %p1488_p8  ;;  %s191_s6 = sshll.u32 %s1397_s30, 4  ;;  %s1503_s6 = int_to_ptr.vmem [resolvable:$true] %s191_s6 }
  0x10   : > { %p1239_p12 = scmp.ne.s32.totalorder %s1766_s1, %s1238_s9  ;;  %p1245_p5 = scmp.lt.u32.totalorder %s1238_s9, %s1766_s1 }
  0x11   : > { %p1499_p11 = pnand %p1143_p9, %p1771_p1 }
  0x13   : > { %p1240_p13 = pneg %p1499_p11 }
  0x15   : > { %p1241_p0 = pnand %p1240_p13, %p1239_p12 }
  0x17   : > { %p1242_p3 = pneg %p1241_p0 }
  0x19   : > { %p1247_p7 = pnand %p1245_p5, %p1242_p3 }
  0x1b   : > { %1250 = shalt.err (!%p1247_p7)
}
  0x1c   : > { %s1251_s14 = scalar_lea.vmem %s1492_s28, 512  ;;  %p1259_p2 = scmp.lt.s32.totalorder %s1492_s28, %s1492_s28 }
  0x1d   : > { %p1252_p9 = scmp.ne.s32.totalorder %s1492_s28, %s1251_s14  ;;  %p1260_p12 = scmp.lt.s32.totalorder %s1251_s14, %s1251_s14 }
  0x1f   : > { %p1254_p10 = pnand %p1252_p9, %p1240_p13  ;;  %p1261_p0 = por %p1260_p12, %p1259_p2 }
  0x21   : > { %p1255_p1 = pneg %p1254_p10 }
  0x23   : > { %p1262_p6 = pnand %p1261_p0, %p1255_p1 }
  0x25   : > { %1265 = shalt.err (!%p1262_p6)
}
  0x26   : > { %s1398_s15 = smov 64   ;;  %s1399_s16 = smov 4  }
  0x27   : > { %1146 = dma.hbm_to_vmem [thread:$0]  (!%p1499_p11), %s1766_s1, 512, %s1492_s28, [#allocation6], %s1398_s15, %s1398_s15, %s1399_s16  }
  0x28   : > { %s1266_s7 = scalar_lea.hbm %s1768_s3, 256 }
  0x29   : > { %p1267_p2 = scmp.ne.s32.totalorder %s1768_s3, %s1266_s7  ;;  %p1273_p10 = scmp.lt.u32.totalorder %s1266_s7, %s1768_s3 }
  0x2b   : > { %p1269_p1 = pnand %p1267_p2, %p1240_p13 }
  0x2d   : > { %p1270_p6 = pneg %p1269_p1 }
  0x2f   : > { %p1275_p3 = pnand %p1273_p10, %p1270_p6 }
  0x31   : > { %1278 = shalt.err (!%p1275_p3)
}
  0x32   : > { %s1279_s28 = scalar_lea.vmem %s1503_s6, 256  ;;  %p1287_p12 = scmp.lt.s32.totalorder %s1503_s6, %s1503_s6 }
  0x33   : > { %p1280_p5 = scmp.ne.s32.totalorder %s1503_s6, %s1279_s28  ;;  %p1288_p0 = scmp.lt.s32.totalorder %s1279_s28, %s1279_s28 }
  0x35   : > { %p1282_p7 = pnand %p1280_p5, %p1240_p13  ;;  %p1289_p2 = por %p1288_p0, %p1287_p12 }
  0x37   : > { %p1283_p9 = pneg %p1282_p7 }
  0x39   : > { %p1290_p1 = pnand %p1289_p2, %p1283_p9 }
  0x3b   : > { %1293 = shalt.err (!%p1290_p1)
}
  0x3c   : > { %1149 = dma.hbm_to_vmem [thread:$0]  (!%p1499_p11), %s1768_s3, 256, %s1503_s6, [#allocation6], %s1398_s15, %s1398_s15, %s1399_s16  }
  0x3d   : > { %s1558_s14 = sadd.s32 1, %s1394_s21   ;;  %s29_s29 = sadd.s32 1, %s1390_s20 }
  0x3e   : > { %s26_s17 = ssub.s32 %s1394_s21, %s1558_s14  ;;  %p36_p13 = scmp.ne.s32.totalorder %s1390_s20, %s1386_s19 }
  0x3f   : > { %p27_p6 = scmp.eq.s32.totalorder %s26_s17, 0  ;;  %p37_p10 = scmp.eq.s32.totalorder %s1394_s21, 0 }
  0x40   : > { %p1778_p3 = scmp.eq.s32.totalorder %s1469_s22, 1  ;;  %p1160_p7 = scmp.lt.s32.totalorder %s1394_s21, 2 }
  0x41   : > { %s1574_s27 = scalar_select %p27_p6, %s1390_s20, %s29_s29  }
  0x42   : > { %p1568_p5 = por %p1778_p3, %p36_p13  ;;  %p38_p9 = por %p37_p10, %p36_p13 }
  0x43   : > { %s208_s30 = sand.u32 1, %s1390_s20   ;;  %s1014_s6 = sshll.u32 %s1394_s21, 7 }
  0x44   : > { %s1779_s23 = scalar_select %p1568_p5, 1, 0 }
  0x45   : > { %s1013_s7 = sshll.u32 %s208_s30, 3  ;;  %s1581_s8 = scalar_lea.hbm %s1765_s0, %s1014_s6 }
  0x46   : > { %s212_s9 = scalar_lea.vmem [#allocation2], %s1013_s7  ;;  %p1585_p11 = pnand %p1160_p7, %p38_p9 }
  0x47   : > { %s219_s10 = sshll.u32 %s212_s9, 4  ;;  %s209_s28 = scalar_lea.sflag [#allocation3], %s208_s30  ;;  %s1583_s10 = int_to_ptr.vmem [resolvable:$true] %s219_s10 }
  0x48   : > { %s1294_s12 = scalar_lea.hbm %s1581_s8, 128  ;;  %p1296_p0 = pneg %p1585_p11 }
  0x49   : > { %p1295_p12 = scmp.ne.s32.totalorder %s1581_s8, %s1294_s12  ;;  %s1299_s17 = scalar_lea.hbm %s1765_s0, 256 }
  0x4a   : > { %p1300_p13 = scmp.lt.u32.totalorder %s1581_s8, %s1765_s0  ;;  %p1301_p6 = scmp.lt.u32.totalorder %s1299_s17, %s1294_s12 }
  0x4b   : > { %p1297_p2 = pnand %p1296_p0, %p1295_p12  ;;  %p1303_p3 = scmp.lt.u32.totalorder %s1294_s12, %s1581_s8 }
  0x4c   : > { %p1302_p10 = por %p1301_p6, %p1300_p13 }
  0x4d   : > { %p1298_p1 = pneg %p1297_p2 }
  0x4e   : > { %p1304_p7 = por %p1303_p3, %p1302_p10 }
  0x50   : > { %p1305_p9 = pnand %p1304_p7, %p1298_p1 }
  0x52   : > { %1308 = shalt.err (!%p1305_p9)
}
  0x53   : > { %s1309_s30 = scalar_lea.vmem %s1583_s10, 128  ;;  %s1400_s15 = smov [#allocation2]  }
  0x54   : > { %p1310_p12 = scmp.ne.s32.totalorder %s1583_s10, %s1309_s30  ;;  %s1314_s16 = sshll.u32 %s1400_s15, 4  ;;  %s1315_s16 = int_to_ptr.vmem [resolvable:$false] %s1314_s16 }
  0x55   : > { %s1316_s9 = scalar_lea.vmem %s1315_s16, 256  ;;  %p1317_p4 = scmp.lt.s32.totalorder %s1583_s10, %s1315_s16 }
  0x56   : > { %p1312_p2 = pnand %p1310_p12, %p1296_p0  ;;  %p1318_p13 = scmp.lt.s32.totalorder %s1316_s9, %s1309_s30 }
  0x58   : > { %p1313_p5 = pneg %p1312_p2  ;;  %p1319_p6 = por %p1318_p13, %p1317_p4 }
  0x5a   : > { %p1320_p10 = pnand %p1319_p6, %p1313_p5 }
  0x5c   : > { %1323 = shalt.err (!%p1320_p10)
}
  0x5d   : > { %1153 = dma.hbm_to_vmem [thread:$0]  (!%p1585_p11), %s1581_s8, 128, %s1583_s10, %s209_s28  }
  0x5e   : > { %228 = sbr.rel (%p1488_p8) target bundleno = 1620 (0x654), region = 40  ;;  %s1617_s12 = sand.u32 (!%p1488_p8), 1, %s1386_s19  }
  0x5f   : > { %s1016_s13 = sshll.u32 (!%p1488_p8), %s1617_s12, 3  ;;  %s231_s29 = scalar_lea.sflag (!%p1488_p8), [#allocation3], %s1617_s12 }
  0x60   : > { %s234_s17 = scalar_lea.vmem (!%p1488_p8), [#allocation2], %s1016_s13  ;;  %p1781_p4 = scmp.ne.s32.totalorder (!%p1488_p8), %s1774_s24, 0 }
  0x65   : > { %1369 = dma.done.wait (%p1781_p4), %s231_s29, 128  }
  0x66   : > { %1371 = vsyncadd (%p1781_p4), %s231_s29, 4294967168  ;;  %p1782_p5 = scmp.eq.s32.totalorder %s1469_s22, 0 }
  0x68   : > { %1373 = dma.done.wait (%p1782_p5), [#allocation6], 768   ;;  %p1783_p11 = pmov %p1782_p5 }
  0x69   : > { %v1401_v0 = vmov 0.0   ;;  %vm1402_vm0 = vmmov 0   ;;  %v1216_v1 = vld [vmem:[#allocation5] sm:$0xff]   ;;  %v1217_v2 = vld [vmem:[#allocation5 + $0x8] sm:$0xff]   ;;  %v1218_v3 = vld [vmem:[#allocation5 + $0x10] sm:$0xff]   ;;  %vm310_vm1 = vcmask 523264  }
  0x6a   : > { %1375 = vsyncadd (%p1783_p11), [#allocation6], 4294966528  ;;  %1063 = vmatprep.subr.bf16.mxu0 %v1401_v0  ;;  %1071 = vmatprep.mubr.msk.bf16.mxu0 %vm1402_vm0, %v1401_v0  ;;  %v1219_v4 = vld [vmem:[#allocation5 + $0x18] sm:$0xff]   ;;  %v1019_v7 = vld [vmem:[%s1767_s2] ss:$0 sm:$0xff]  ;;  %s1403_s8 = smov 120  }
  0x6b   : > { %1075 = vmatprep.subr.bf16.mxu1 %v1401_v0  ;;  %1077 = vmatprep.mubr.msk.bf16.mxu1 %vm1402_vm0, %v1401_v0  ;;  %v269_v5 = vld [vmem:[%s234_s17] sm:$0xff]  ;;  %s1404_s10 = smov 96   ;;  %s1405_s11 = smov 80   ;;  %vm358_vm2 = vcmask 64512   ;;  %vm431_vm3 = vcmask 1043456   ;;  %vm842_vm4 = vcmask 130048  }
  0x6c   : > { %1064 = vmatpush3.bf16.msra.mxu0 %v1216_v1  ;;  %v270_v6 = vpack.c.bf16 %v269_v5, %v269_v5  ;;  %s1406_s28 = smov 88   ;;  %s1407_s7 = smov 72   ;;  %vm844_vm5 = vcmask 195584   ;;  %vm864_vm6 = vcmask 261120   ;;  %vm908_vm7 = vcmask 516096  }
  0x6d   : > { %1065 = vmatprep.subr.bf16.mxu0 %v1401_v0  ;;  %s1408_s6 = smov 112   ;;  %s1409_s30 = smov 104  }
  0x6e   : > { %s1410_s15 = smov 56   ;;  %s1411_s16 = smov 64  }
  0x6f   : > { %s1412_s9 = smov 40   ;;  %s1413_s13 = smov 48  }
  0x70   : > { %1066 = vmatpush3.bf16.msra.mxu0 %v1217_v2  ;;  %s1414_s29 = smov 8   ;;  %s1415_s17 = smov 16  }
  0x71   : > { %1067 = vmatprep.subr.bf16.mxu0 %v1401_v0  ;;  %s1416_s24 = smov 24   ;;  %p1784_p0 = scmp.ne.s32.totalorder %s1779_s23, 0 }
  0x74   : > { %1068 = vmatpush3.bf16.msra.mxu0 %v1218_v3 }
  0x75   : > { %1069 = vmatprep.subr.bf16.mxu0 %v1401_v0 }
  0x78   : > { %1070 = vmatpush3.bf16.msra.mxu0 %v1219_v4 }
  0x79   : > { %1087 = vmatprep.subr.bf16.mxu0 %v1401_v0 }
  0x7b   : > { %1072 = vmatmul.mubr.msk.bf16.vlgmr.msra.gmra.mrb[0].mxu0 %vm310_vm1, %v270_v6 }
  0x7c   : > { %1089 = vmatprep.mubr.msk.bf16.mxu0 %vm1402_vm0, %v1401_v0 }
 0x14e   : > { %v348_v8 = vpop.f32.mrb[0].mxu0 }
 0x14f   : > { %v349_v9 = vadd.f32 %v1019_v7, %v348_v8  ;;  %v1073_v10 = vpop.f32.mrb[1].mxu0 }
 0x150   : > { %v351_v11 = vpop.f32.mrb[2].mxu0 }
 0x151   : > { %v1644_v12 = vpack.c.bf16 %v349_v9, %v349_v9  ;;  %v1074_v13 = vpop.f32.mrb[3].mxu0 }
 0x153   : > { %475 = vrot.lane.b32.xlu1 %v1644_v12, %s1403_s8  ;;  %356 = vrot.lane.b32.xlu0 %v1644_v12, %s1404_s10  ;;  %s1036_s10 = sshll.u32 %s1469_s22, 4  ;;  %s911_s22 = scalar_lea.sflag [#allocation4], %s1617_s12 }
 0x157   : > { %595 = vrot.lane.b32.xlu1 %v1644_v12, %s1405_s11  ;;  %477 = vrot.lane.b32.xlu0 %v1644_v12, %s1406_s28  ;;  %s267_s11 = scalar_lea.vmem [#allocation8], %s1617_s12 }
 0x158   : > { %s923_s28 = sshll.u32 %s267_s11, 4  ;;  %s1723_s28 = int_to_ptr.vmem [resolvable:$true] %s923_s28 }
 0x15b   : > { %713 = vrot.lane.b32.xlu1 %v1644_v12, %s1407_s7  ;;  %593 = vrot.lane.b32.xlu0 %v1644_v12, %s1408_s6 }
 0x15f   : > { %711 = vrot.lane.b32.xlu0 %v1644_v12, %s1409_s30  ;;  %s1721_s30 = scalar_lea.hbm %s1770_s5, %s1036_s10 }
 0x1c5   : > { %v357_v14 = vpop.permute.xlu0 %356  ;;  %v476_v16 = vpop.permute.xlu1 %475 }
 0x1c6   : > { %v363_v15 = vsel %vm358_vm2, %v357_v14, 0 }
 0x1c7   : > { %1076 = vmatpush3.bf16.xpose.msra.mxu1 %v363_v15 }
 0x1c8   : > { %1081 = vmatprep.subr.bf16.mxu1 %v1401_v0 }
 0x1c9   : > { %v478_v17 = vpop.permute.xlu0 %477  ;;  %v596_v19 = vpop.permute.xlu1 %595 }
 0x1ca   : > { %v483_v18 = vsel %vm358_vm2, %v478_v17, 0  ;;  %v601_v20 = vsel %vm358_vm2, %v596_v19, 0 }
 0x1cb   : > { %1088 = vmatpush3.bf16.xpose.msra.mxu0 %v483_v18 }
 0x1cc   : > { %1099 = vmatprep.subr.bf16.mxu0 %v1401_v0 }
 0x1cd   : > { %v714_v21 = vpop.permute.xlu1 %713  ;;  %v594_v22 = vpop.permute.xlu0 %593 }
 0x1ce   : > { %1078 = vmatmul.mubr.msk.bf16.vlgmr.msra.gmra.mrb[0].mxu1 %vm358_vm2, %v1644_v12  ;;  %v719_v23 = vsel %vm358_vm2, %v714_v21, 0 }
 0x1cf   : > { %1083 = vmatprep.mubr.msk.bf16.mxu1 %vm1402_vm0, %v1401_v0 }
 0x1d1   : > { %v712_v24 = vpop.permute.xlu0 %711 }
 0x1d2   : > { %1090 = vmatmul.mubr.msk.bf16.vlgmr.msra.gmra.mrb[4].mxu0 %vm358_vm2, %v476_v16 }
 0x1d3   : > { %1100 = vmatpush3.bf16.xpose.msra.mxu0 %v601_v20  ;;  %1101 = vmatprep.mubr.msk.bf16.mxu0 %vm1402_vm0, %v1401_v0 }
 0x1d4   : > { %1111 = vmatprep.subr.bf16.mxu0 %v1401_v0 }
 0x1da   : > { %1102 = vmatmul.mubr.msk.bf16.vlgmr.msra.gmra.mrb[8].mxu0 %vm358_vm2, %v594_v22 }
 0x1db   : > { %1112 = vmatpush3.bf16.xpose.msra.mxu0 %v719_v23  ;;  %1113 = vmatprep.mubr.msk.bf16.mxu0 %vm1402_vm0, %v1401_v0 }
 0x1dc   : > { %1123 = vmatprep.subr.bf16.mxu0 %v1401_v0 }
 0x1e2   : > { %1114 = vmatmul.mubr.msk.bf16.vlgmr.msra.gmra.mrb[12].mxu0 %vm358_vm2, %v712_v24 }
 0x1e3   : > { %1127 = vmatprep.mubr.msk.bf16.mxu0 %vm1402_vm0, %v1401_v0 }
 0x2a1   : > { %v399_v25 = vpop.f32.mrb[0].mxu1 }
 0x2a2   : > { %v1079_v26 = vpop.f32.mrb[1].mxu1  ;;  %v405_v27 = vsel %vm358_vm2, %v399_v25, -inf }
 0x2a3   : > { %406 = vmax.xlane.f32.xlu1 %v405_v27  ;;  %v402_v28 = vpop.f32.mrb[2].mxu1 }
 0x2a4   : > { %v1080_v29 = vpop.f32.mrb[3].mxu1 }
 0x2a5   : > { %v519_v30 = vpop.f32.mrb[4].mxu0 }
 0x2a6   : > { %v1091_v31 = vpop.f32.mrb[5].mxu0  ;;  %v525_v32 = vsel %vm358_vm2, %v519_v30, -inf }
 0x2a7   : > { %526 = vmax.xlane.f32.xlu0 %v525_v32  ;;  %v522_v33 = vpop.f32.mrb[6].mxu0 }
 0x2a8   : > { %v1092_v34 = vpop.f32.mrb[7].mxu0 }
 0x2ad   : > { %v637_v35 = vpop.f32.mrb[8].mxu0 }
 0x2ae   : > { %v1103_v36 = vpop.f32.mrb[9].mxu0  ;;  %v643_v37 = vsel %vm358_vm2, %v637_v35, -inf }
 0x2af   : > { %644 = vmax.xlane.f32.xlu0 %v643_v37  ;;  %v640_v38 = vpop.f32.mrb[10].mxu0 }
 0x2b0   : > { %v1104_v39 = vpop.f32.mrb[11].mxu0 }
 0x2b5   : > { %v755_v40 = vpop.f32.mrb[12].mxu0 }
 0x2b6   : > { %v1115_v41 = vpop.f32.mrb[13].mxu0  ;;  %v761_v42 = vsel %vm358_vm2, %v755_v40, -inf }
 0x2b7   : > { %762 = vmax.xlane.f32.xlu1 %v761_v42  ;;  %v758_v43 = vpop.f32.mrb[14].mxu0 }
 0x2b8   : > { %v1116_v44 = vpop.f32.mrb[15].mxu0 }
 0x330   : > { %v407_v45 = vpop.xlane.xlu1 %406 }
 0x331   : > { %v408_v46 = vsub.f32 %v399_v25, %v407_v45 }
 0x333   : > { %v409_v47 = vmul.f32 1.442695, %v408_v46 }
 0x334   : > { %v527_v48 = vpop.xlane.xlu0 %526 }
 0x335   : > { %1222 = vpow2.f32 %v409_v47  ;;  %v528_v49 = vsub.f32 %v519_v30, %v527_v48 }
 0x337   : > { %v529_v50 = vmul.f32 1.442695, %v528_v49 }
 0x339   : > { %1224 = vpow2.f32 %v529_v50 }
 0x33c   : > { %v645_v51 = vpop.xlane.xlu0 %644 }
 0x33d   : > { %v646_v52 = vsub.f32 %v637_v35, %v645_v51 }
 0x33f   : > { %v1223_v53 = vpop.eup %1222  ;;  %v647_v54 = vmul.f32 1.442695, %v646_v52 }
 0x340   : > { %v411_v55 = vsel %vm358_vm2, %v1223_v53, 0.0 }
 0x341   : > { %1226 = vpow2.f32 %v647_v54  ;;  %412 = vadd.xlane.f32.xlu0 %v411_v55 }
 0x343   : > { %v1225_v56 = vpop.eup %1224 }
 0x344   : > { %v531_v57 = vsel %vm358_vm2, %v1225_v56, 0.0  ;;  %v763_v60 = vpop.xlane.xlu1 %762 }
 0x345   : > { %532 = vadd.xlane.f32.xlu1 %v531_v57  ;;  %v764_v61 = vsub.f32 %v755_v40, %v763_v60 }
 0x347   : > { %v765_v62 = vmul.f32 1.442695, %v764_v61 }
 0x349   : > { %1228 = vpow2.f32 %v765_v62 }
 0x34b   : > { %v1227_v58 = vpop.eup %1226 }
 0x34c   : > { %v649_v59 = vsel %vm358_vm2, %v1227_v58, 0.0 }
 0x34d   : > { %650 = vadd.xlane.f32.xlu0 %v649_v59 }
 0x353   : > { %v1684_v63 = vpop.eup %1228 }
 0x354   : > { %v767_v1 = vsel %vm358_vm2, %v1684_v63, 0.0 }
 0x356   : > { %545 = vrot.lane.b32.xlu1 %v1644_v12, %s1410_s15  ;;  %s1324_s15 = scalar_lea.vmem %s1723_s28, 16 }
 0x357   : > { %p1325_p8 = scmp.ne.s32.totalorder %s1723_s28, %s1324_s15 }
 0x359   : > { %p1326_p1 = pnand %p1325_p8, %p1784_p0 }
 0x35b   : > { %p1327_p3 = pneg %p1326_p1 }
 0x363   : > { %426 = vrot.lane.b32.xlu0 %v1644_v12, %s1411_s16  ;;  %s1417_s16 = smov [#allocation8]  }
 0x367   : > { %781 = vrot.lane.b32.xlu0 %v1644_v12, %s1412_s9  ;;  %s1328_s9 = sshll.u32 %s1417_s16, 4  ;;  %s1329_s9 = int_to_ptr.vmem [resolvable:$false] %s1328_s9 }
 0x368   : > { %p1331_p7 = scmp.lt.s32.totalorder %s1723_s28, %s1329_s9 }
 0x37a   : > { %768 = vadd.xlane.f32.xlu1 %v767_v1 }
 0x38b   : > { %663 = vrot.lane.b32.xlu1 %v1644_v12, %s1413_s13  ;;  %s1330_s13 = scalar_lea.vmem %s1329_s9, 32 }
 0x38c   : > { %p1332_p9 = scmp.lt.s32.totalorder %s1330_s13, %s1324_s15 }
 0x38e   : > { %p1333_p12 = por %p1332_p9, %p1331_p7 }
 0x390   : > { %p1334_p2 = pnand %p1333_p12, %p1327_p3 }
 0x3ce   : > { %v413_v2 = vpop.xlane.xlu0 %412 }
 0x3cf   : > { %1230 = vrcp.f32 %v413_v2 }
 0x3d2   : > { %v533_v3 = vpop.xlane.xlu1 %532 }
 0x3d3   : > { %1232 = vrcp.f32 %v533_v3  ;;  %v1220_v3 = vld [vmem:[#allocation7] sm:$0xff]  }
 0x3d4   : > { %1124 = vmatpush3.bf16.msra.mxu0 %v1220_v3 }
 0x3d5   : > { %1125 = vmatprep.subr.bf16.mxu0 %v1401_v0 }
 0x3d6   : > { %v546_v26 = vpop.permute.xlu1 %545 }
 0x3d7   : > { %v551_v30 = vsel %vm431_vm3, %v546_v26, 0 }
 0x3d9   : > { %v1231_v4 = vpop.eup %1230 }
 0x3da   : > { %v415_v5 = vmul.f32 %v1231_v4, %v1223_v53  ;;  %v651_v6 = vpop.xlane.xlu0 %650 }
 0x3db   : > { %1234 = vrcp.f32 %v651_v6 }
 0x3dc   : > { %v416_v7 = vsel %vm358_vm2, %v415_v5, 0.0 }
 0x3dd   : > { %v1233_v8 = vpop.eup %1232  ;;  %v417_v9 = vrot.slane %v416_v7, 4 }
 0x3de   : > { %v535_v10 = vmul.f32 %v1233_v8, %v1225_v56  ;;  %v427_v11 = vpop.permute.xlu0 %426  ;;  %v1221_v8 = vld [vmem:[#allocation7 + $0x8] sm:$0xff]  }
 0x3df   : > { %v418_v13 = vadd.f32 %v417_v9, %v416_v7  ;;  %v433_v14 = vsel %vm431_vm3, %v427_v11, 0  ;;  %1126 = vmatpush3.bf16.msra.mxu0 %v1221_v8 }
 0x3e0   : > { %v536_v12 = vsel %vm358_vm2, %v535_v10, 0.0  ;;  %1082 = vmatpush3.bf16.msra.mxu1 %v433_v14 }
 0x3e1   : > { %v419_v15 = vrot.slane %v418_v13, 2  ;;  %v537_v16 = vrot.slane %v536_v12, 4  ;;  %1093 = vmatprep.subr.bf16.mxu1 %v1401_v0 }
 0x3e2   : > { %v782_v44 = vpop.permute.xlu0 %781 }
 0x3e3   : > { %v538_v17 = vadd.f32 %v537_v16, %v536_v12  ;;  %v420_v18 = vadd.f32 %v419_v15, %v418_v13  ;;  %v787_v46 = vsel %vm431_vm3, %v782_v44, 0 }
 0x3e5   : > { %v539_v19 = vrot.slane %v538_v17, 2  ;;  %v421_v20 = vrot.slane %v420_v18, 1  ;;  %v1235_v23 = vpop.eup %1234 }
 0x3e6   : > { %v653_v27 = vmul.f32 %v1235_v23, %v1227_v58 }
 0x3e7   : > { %v422_v21 = vadd.f32 %v421_v20, %v420_v18  ;;  %v540_v22 = vadd.f32 %v539_v19, %v538_v17  ;;  %v851_v19 = vld [vmem:[%s1769_s4] sm:$0x1] }
 0x3e8   : > { %v654_v31 = vsel %vm358_vm2, %v653_v27, 0.0 }
 0x3e9   : > { %v424_v24 = vmul.f32 0.125, %v422_v21  ;;  %v541_v25 = vrot.slane %v540_v22, 1  ;;  %v655_v33 = vrot.slane %v654_v31, 4 }
 0x3eb   : > { %v425_v28 = vpack.c.bf16 %v424_v24, %v424_v24  ;;  %v542_v29 = vadd.f32 %v541_v25, %v540_v22  ;;  %v656_v35 = vadd.f32 %v655_v33, %v654_v31 }
 0x3ed   : > { %1084 = vmatmul.mubr.msk.bf16.vlgmr.msra.gmra.mrb[4].mxu1 %vm358_vm2, %v425_v28  ;;  %v543_v32 = vmul.f32 0.125, %v542_v29  ;;  %v657_v36 = vrot.slane %v656_v35, 2 }
 0x3ee   : > { %1094 = vmatpush3.bf16.msra.mxu1 %v551_v30  ;;  %1095 = vmatprep.mubr.msk.bf16.mxu1 %vm1402_vm0, %v1401_v0 }
 0x3ef   : > { %1105 = vmatprep.subr.bf16.mxu1 %v1401_v0  ;;  %v544_v34 = vpack.c.bf16 %v543_v32, %v543_v32  ;;  %v658_v37 = vadd.f32 %v657_v36, %v656_v35 }
 0x3f1   : > { %v659_v38 = vrot.slane %v658_v37, 1 }
 0x3f3   : > { %v660_v39 = vadd.f32 %v659_v38, %v658_v37 }
 0x3f5   : > { %1096 = vmatmul.mubr.msk.bf16.vlgmr.msra.gmra.mrb[8].mxu1 %vm358_vm2, %v544_v34  ;;  %v661_v41 = vmul.f32 0.125, %v660_v39 }
 0x3f6   : > { %1107 = vmatprep.mubr.msk.bf16.mxu1 %vm1402_vm0, %v1401_v0 }
 0x3f7   : > { %v662_v45 = vpack.c.bf16 %v661_v41, %v661_v41 }
 0x407   : > { %v769_v40 = vpop.xlane.xlu1 %768 }
 0x408   : > { %1236 = vrcp.f32 %v769_v40 }
 0x40b   : > { %v664_v42 = vpop.permute.xlu1 %663 }
 0x40c   : > { %v669_v43 = vsel %vm431_vm3, %v664_v42, 0 }
 0x40d   : > { %1106 = vmatpush3.bf16.msra.mxu1 %v669_v43 }
 0x40e   : > { %1117 = vmatprep.subr.bf16.mxu1 %v1401_v0 }
 0x410   : > { %1108 = vmatmul.mubr.msk.bf16.vlgmr.msra.gmra.mrb[12].mxu1 %vm358_vm2, %v662_v45 }
 0x411   : > { %1118 = vmatpush3.bf16.msra.mxu1 %v787_v46  ;;  %1119 = vmatprep.mubr.msk.bf16.mxu1 %vm1402_vm0, %v1401_v0 }
 0x412   : > { %v1237_v47 = vpop.eup %1236 }
 0x413   : > { %v771_v48 = vmul.f32 %v1237_v47, %v1684_v63 }
 0x415   : > { %v772_v49 = vsel %vm358_vm2, %v771_v48, 0.0 }
 0x416   : > { %v773_v50 = vrot.slane %v772_v49, 4 }
 0x418   : > { %v774_v51 = vadd.f32 %v773_v50, %v772_v49 }
 0x41a   : > { %v775_v52 = vrot.slane %v774_v51, 2 }
 0x41c   : > { %v776_v53 = vadd.f32 %v775_v52, %v774_v51 }
 0x41e   : > { %v777_v54 = vrot.slane %v776_v53, 1 }
 0x420   : > { %v778_v55 = vadd.f32 %v777_v54, %v776_v53 }
 0x422   : > { %v779_v56 = vmul.f32 0.125, %v778_v55 }
 0x424   : > { %v780_v57 = vpack.c.bf16 %v779_v56, %v779_v56 }
 0x426   : > { %1120 = vmatmul.mubr.msk.bf16.vlgmr.msra.gmra.mrb[16].mxu1 %vm358_vm2, %v780_v57 }
 0x4c0   : > { %v469_v58 = vpop.f32.mrb[4].mxu1 }
 0x4c1   : > { %v1085_v59 = vpop.f32.mrb[5].mxu1 }
 0x4c2   : > { %v472_v60 = vpop.f32.mrb[6].mxu1 }
 0x4c3   : > { %v1086_v61 = vpop.f32.mrb[7].mxu1 }
 0x4c8   : > { %v587_v62 = vpop.f32.mrb[8].mxu1 }
 0x4c9   : > { %830 = vrot.lane.b32.xlu1 %v587_v62, %s1414_s29  ;;  %v1097_v63 = vpop.f32.mrb[9].mxu1 }
 0x4ca   : > { %v590_v1 = vpop.f32.mrb[10].mxu1 }
 0x4cb   : > { %v1098_v2 = vpop.f32.mrb[11].mxu1 }
 0x4e3   : > { %v705_v4 = vpop.f32.mrb[12].mxu1 }
 0x4e4   : > { %834 = vrot.lane.b32.xlu0 %v705_v4, %s1415_s17  ;;  %v1109_v5 = vpop.f32.mrb[13].mxu1 }
 0x4e5   : > { %v708_v6 = vpop.f32.mrb[14].mxu1 }
 0x4e6   : > { %v1110_v7 = vpop.f32.mrb[15].mxu1 }
 0x4f9   : > { %v823_v9 = vpop.f32.mrb[16].mxu1 }
 0x4fa   : > { %838 = vrot.lane.b32.xlu1 %v823_v9, %s1416_s24  ;;  %v1121_v10 = vpop.f32.mrb[17].mxu1 }
 0x4fb   : > { %v826_v11 = vpop.f32.mrb[18].mxu1 }
 0x4fc   : > { %v1122_v13 = vpop.f32.mrb[19].mxu1 }
 0x53b   : > { %v831_v14 = vpop.permute.xlu1 %830 }
 0x53c   : > { %v841_v0 = vsel %vm358_vm2, %v469_v58, %v831_v14 }
 0x556   : > { %v835_v12 = vpop.permute.xlu0 %834 }
 0x557   : > { %v843_v15 = vsel %vm842_vm4, %v841_v0, %v835_v12 }
 0x56c   : > { %v839_v16 = vpop.permute.xlu1 %838 }
 0x56d   : > { %v845_v17 = vsel %vm844_vm5, %v843_v15, %v839_v16 }
 0x56e   : > { %v846_v18 = vpack.c.bf16 %v845_v17, %v845_v17 }
 0x570   : > { %1128 = vmatmul.mubr.msk.bf16.vlgmr.msra.gmra.mrb[16].mxu0 %vm864_vm6, %v846_v18 }
 0x643   : > { %v902_v20 = vpop.f32.mrb[16].mxu0 }
 0x644   : > { %v903_v21 = vadd.f32 %v902_v20, %v851_v19  ;;  %v1129_v22 = vpop.f32.mrb[17].mxu0 }
 0x645   : > { %v905_v23 = vpop.f32.mrb[18].mxu0 }
 0x646   : > { %v1130_v24 = vpop.f32.mrb[19].mxu0  ;;  %909 = vst.msk [vmem:[%s267_s11] sm:$0x1] %vm908_vm7, %v903_v21 }
 0x647   : > { %1337 = shalt.err (!%p1334_p2)
}
 0x648   : > { %s1338_s12 = scalar_lea.hbm %s1721_s30, 16  ;;  %s1342_s24 = scalar_lea.hbm %s1770_s5, 32 }
 0x649   : > { %p1339_p13 = scmp.ne.s32.totalorder %s1721_s30, %s1338_s12  ;;  %p1343_p4 = scmp.lt.u32.totalorder %s1721_s30, %s1770_s5 }
 0x64a   : > { %p1344_p5 = scmp.lt.u32.totalorder %s1342_s24, %s1338_s12  ;;  %p1346_p8 = scmp.lt.u32.totalorder %s1338_s12, %s1721_s30 }
 0x64b   : > { %p1340_p6 = pnand %p1339_p13, %p1784_p0 }
 0x64c   : > { %p1345_p11 = por %p1344_p5, %p1343_p4 }
 0x64d   : > { %p1341_p10 = pneg %p1340_p6 }
 0x64e   : > { %p1347_p1 = por %p1346_p8, %p1345_p11 }
 0x650   : > { %p1348_p3 = pnand %p1347_p1, %p1341_p10 }
 0x652   : > { %1351 = shalt.err (!%p1348_p3)
}
 0x653   : > { %1141 = dma.vmem_to_hbm [thread:$0]  (%p1784_p0), %s1723_s28, 16, %s1721_s30, %s911_s22  }
 0x654 PF: > { %s935_s10 = sand.u32 1, %s1382_s18   ;;  %p1785_p7 = scmp.ne.s32.totalorder %s1775_s25, 0 }
 0x655   : > { %p1786_p9 = scmp.ge.s32.totalorder %s1394_s21, 2  ;;  %s936_s11 = scalar_lea.sflag [#allocation4], %s935_s10 }
 0x657   : > { %p1155_p12 = pnand %p1786_p9, %p1785_p7 }
 0x659   : > { %1377 = dma.done.wait (!%p1155_p12), %s936_s11, 16  }
 0x65a   : > { %1379 = vsyncadd (!%p1155_p12), %s936_s11, 4294967280  ;;  %p19_p2 = scmp.ge.s32.totalorder %s1558_s14, 4   ;;  %s1787_s18 = smov %s1386_s19 }
 0x65b   : > { %s1788_s19 = smov %s1390_s20  ;;  %s1789_s20 = smov %s1574_s27 }
 0x65c   : > { %s1790_s21 = smov %s1558_s14  ;;  %21 = sbr.rel (!%p19_p2) target bundleno = 6 (0x6), region = 93 }
 0x663   :  { %940 = vsyncpa [#allocation3], 1 }
 0x664   :  { %942 = vsyncpa [#allocation3 + $0x1], 1 }
 0x665   :  { %943 = vsyncpa [#allocation6], 1 }
 0x666   :  { %944 = vsyncpa [#allocation4], 1 }
 0x667   :  { %946 = vsyncpa [#allocation4 + $0x1], 1 }

</bundles_post_ra>
